<compile_context>
chip_gen: v6e
topology: v6e:2x2x1
jax: 0.10.0
libtpu: 0.0.40
codegen_flags: <defaults>
</compile_context>

<pallas_src>
import math

import jax
import jax.numpy as jnp
from jax import lax
from jax.experimental import pallas as pl
from jax.experimental.pallas import tpu as pltpu

ALPHA_MI = 1.0
ALPHA_ADV = 0.5
ALPHA_DCOR = 0.3
_LOG_EPS = math.log(1e-8)          # matches torch's  log(mean(exp(s)) + 1e-8)


# ----------------------------- numeric helpers -----------------------------
def _softplus(x):
    # stable softplus with only exp/log (EUP-friendly):  log(1 + e^x)
    return jnp.maximum(x, 0.0) + jnp.log(1.0 + jnp.exp(-jnp.abs(x)))


def _logaddexp(a, b):
    m = jnp.maximum(a, b)
    return m + jnp.log(jnp.exp(a - m) + jnp.exp(b - m))


# --------------------------- MLP / MINE / BCE kernel ------------------------
def _make_mlp_kernel(total_batch):
    """Batch-tiled kernel computing MINE MI estimate and generator BCE loss."""

    def kernel(base_ref, wea_ref, wpm_ref, wpa_ref,
               mW1b_ref, mW1w_ref, mW2_ref, mAUX_ref,
               dW1b_ref, dW1w_ref, dW2_ref, dAUX_ref,
               out_ref, acc_ref):
        t = pl.program_id(0)
        nt = pl.num_programs(0)
        tb = base_ref.shape[0]

        sub = lax.broadcasted_iota(jnp.int32, acc_ref.shape, 0)

        @pl.when(t == 0)
        def _init():
            # row 0: sum(joint mine scores), row 1: running max, row 2: sum-exp,
            # row 3: sum softplus(joint disc logits), row 4: sum softplus(-marg)
            acc_ref[...] = jnp.where(sub == 1, -1e30, 0.0)

        base_t = base_ref[...]
        wea_t = wea_ref[...]
        wpm_t = wpm_ref[...]
        wpa_t = wpa_ref[...]

        def head(w1b, w1w, w2, aux, wmarg_t):
            b1 = aux[0:1, :]
            b2 = aux[1:2, :]
            w3 = aux[2:3, :]               # final-layer weights as a lane row
            b3 = aux[3, 0]
            bproj = jnp.dot(base_t, w1b, preferred_element_type=jnp.float32)
            pj = bproj + jnp.dot(wea_t, w1w, preferred_element_type=jnp.float32)
            pm = bproj + jnp.dot(wmarg_t, w1w, preferred_element_type=jnp.float32)
            # stack joint + marginal rows -> one 2B-row pass through layer 2
            h1 = jnp.maximum(jnp.concatenate([pj, pm], axis=0) + b1, 0.0)
            h2 = jnp.maximum(
                jnp.dot(h1, w2, preferred_element_type=jnp.float32) + b2, 0.0)
            # (H,1) projection on the VPU/XLU, keeps the MXU out of N=1 work
            scores = jnp.sum(h2 * w3, axis=1, keepdims=True) + b3
            return scores[:tb], scores[tb:]

        mj, mm = head(mW1b_ref[...], mW1w_ref[...], mW2_ref[...],
                      mAUX_ref[...], wpm_t)
        dj, dm = head(dW1b_ref[...], dW1w_ref[...], dW2_ref[...],
                      dAUX_ref[...], wpa_t)

        acc = acc_ref[...]
        # ---- MINE pieces (streaming log-sum-exp over batch tiles) ----
        sum_joint = acc[0, 0] + jnp.sum(mj)
        m_old = acc[1, 0]
        m_new = jnp.maximum(m_old, jnp.max(mm))
        s_new = acc[2, 0] * jnp.exp(m_old - m_new) + jnp.sum(jnp.exp(mm - m_new))
        # ---- generator BCE from logits: joint vs 0, marginal vs 1 ----
        bce_j = acc[3, 0] + jnp.sum(jnp.minimum(_softplus(dj), 100.0))
        bce_m = acc[4, 0] + jnp.sum(jnp.minimum(_softplus(-dm), 100.0))

        acc_ref[...] = jnp.where(sub == 0, sum_joint,
                       jnp.where(sub == 1, m_new,
                       jnp.where(sub == 2, s_new,
                       jnp.where(sub == 3, bce_j,
                       jnp.where(sub == 4, bce_m, 0.0)))))

        @pl.when(t == nt - 1)
        def _finalize():
            bf = jnp.float32(total_batch)
            mean_joint = sum_joint / bf
            log_mean_exp = m_new + jnp.log(s_new) - jnp.log(bf)
            mi = mean_joint - _logaddexp(log_mean_exp, jnp.float32(_LOG_EPS))
            adv = bce_j / bf + bce_m / bf
            osub = lax.broadcasted_iota(jnp.int32, out_ref.shape, 0)
            out_ref[...] = jnp.where(osub == 0, mi,
                           jnp.where(osub == 1, adv, 0.0))

    return kernel


# --------------------------- distance-correlation kernel --------------------
def _dcor_kernel(bi_ref, bj_ref, wi_ref, wj_ref, scal_ref, rsa_ref, rsb_ref):
    """Tile (i,j) of the pairwise-distance matrices; accumulate raw sums."""
    i = pl.program_id(0)
    j = pl.program_id(1)

    bi = bi_ref[...]
    bj = bj_ref[...]
    wi = wi_ref[...]
    wj = wj_ref[...]

    def dist(x, y):
        sx = jnp.sum(x * x, axis=-1, keepdims=True)          # (T,1)
        sy = jnp.sum(y * y, axis=-1, keepdims=True)          # (T,1)
        g = lax.dot_general(x, y, (((1,), (1,)), ((), ())),
                            preferred_element_type=jnp.float32)
        d2 = jnp.maximum(sx + sy.T - 2.0 * g, 0.0)
        return jnp.sqrt(d2)

    a = dist(bi, bj)
    b = dist(wi, wj)

    s_aa = jnp.sum(a * a)
    s_bb = jnp.sum(b * b)
    s_ab = jnp.sum(a * b)
    sub = lax.broadcasted_iota(jnp.int32, scal_ref.shape, 0)
    part = jnp.where(sub == 0, s_aa,
           jnp.where(sub == 1, s_bb,
           jnp.where(sub == 2, s_ab, 0.0)))

    @pl.when((i == 0) & (j == 0))
    def _():
        scal_ref[...] = jnp.zeros_like(scal_ref)

    scal_ref[...] += part

    ra = jnp.broadcast_to(jnp.sum(a, axis=1, keepdims=True), rsa_ref.shape)
    rb = jnp.broadcast_to(jnp.sum(b, axis=1, keepdims=True), rsb_ref.shape)

    @pl.when(j == 0)
    def _():
        rsa_ref[...] = jnp.zeros_like(rsa_ref)
        rsb_ref[...] = jnp.zeros_like(rsb_ref)

    rsa_ref[...] += ra
    rsb_ref[...] += rb


# -------------------------------- wrapper ----------------------------------
def _pick_tile(n):
    for t in (512, 256, 128, 64, 32, 16, 8):
        if n % t == 0:
            return t
    return n


def _pack_network(w1, b1, w2, b2, w3, b3, base_dim):
    """Zero-pad hidden dim to a multiple of 128 and pack into 4 arrays."""
    d, h = w1.shape
    hp = max(128, ((h + 127) // 128) * 128)
    w1p = jnp.zeros((d, hp), jnp.float32).at[:, :h].set(w1.astype(jnp.float32))
    w2p = jnp.zeros((hp, hp), jnp.float32).at[:h, :h].set(w2.astype(jnp.float32))
    aux = jnp.zeros((8, hp), jnp.float32)
    aux = aux.at[0, :h].set(b1.reshape(-1).astype(jnp.float32))
    aux = aux.at[1, :h].set(b2.reshape(-1).astype(jnp.float32))
    aux = aux.at[2, :h].set(w3.reshape(-1).astype(jnp.float32))
    aux = aux.at[3, :].set(jnp.asarray(b3, jnp.float32).reshape(-1)[0])
    return w1p[:base_dim], w1p[base_dim:], w2p, aux


def composite_causal_loss(base, weather, params, perm_key):
    """base: [B, base_dim], weather: [B, weather_dim]."""
    base = base.astype(jnp.float32)
    weather = weather.astype(jnp.float32)
    B, base_dim = base.shape
    weather_dim = weather.shape[1]

    # TODO(synk): torch.randperm draws fresh permutations every call; callers
    # must thread a new perm_key per step to reproduce that behaviour.
    k_mine, k_adv = jax.random.split(perm_key)
    wpm = weather[jax.random.permutation(k_mine, B)]
    wpa = weather[jax.random.permutation(k_adv, B)]

    (mw1, mb1, mw2, mb2, mw3, mb3, dw1, db1, dw2, db2, dw3, db3) = params
    m_pack = _pack_network(mw1, mb1, mw2, mb2, mw3, mb3, base_dim)
    d_pack = _pack_network(dw1, db1, dw2, db2, dw3, db3, base_dim)
    hp_m = m_pack[2].shape[0]
    hp_d = d_pack[2].shape[0]

    # ---------------- MLP / MINE / adversarial (batch-tiled) ----------------
    tb = _pick_tile(B)
    n_tb = B // tb
    row = lambda t: (t, 0)
    const2 = lambda t: (0, 0)
    mlp_in_specs = [
        pl.BlockSpec((tb, base_dim), row),
        pl.BlockSpec((tb, weather_dim), row),
        pl.BlockSpec((tb, weather_dim), row),
        pl.BlockSpec((tb, weather_dim), row),
        pl.BlockSpec((base_dim, hp_m), const2),
        pl.BlockSpec((weather_dim, hp_m), const2),
        pl.BlockSpec((hp_m, hp_m), const2),
        pl.BlockSpec((8, hp_m), const2),
        pl.BlockSpec((base_dim, hp_d), const2),
        pl.BlockSpec((weather_dim, hp_d), const2),
        pl.BlockSpec((hp_d, hp_d), const2),
        pl.BlockSpec((8, hp_d), const2),
    ]
    mlp_flops = 8 * B * hp_m * (base_dim + 2 * weather_dim + 2 * hp_m)
    mlp_bytes = 4 * (B * (base_dim + 3 * weather_dim)
                     + 2 * (base_dim + weather_dim + hp_m + 8) * hp_m + 8 * 128)

    mlp_out = pl.pallas_call(
        _make_mlp_kernel(B),
        out_shape=jax.ShapeDtypeStruct((8, 128), jnp.float32),
        grid_spec=pltpu.PrefetchScalarGridSpec(
            num_scalar_prefetch=0,
            grid=(n_tb,),
            in_specs=mlp_in_specs,
            out_specs=pl.BlockSpec((8, 128), lambda t: (0, 0)),
            scratch_shapes=[pltpu.VMEM((8, 128), jnp.float32)],
        ),
        compiler_params=pltpu.CompilerParams(
            dimension_semantics=("arbitrary",)),
        cost_estimate=pl.CostEstimate(flops=int(mlp_flops),
                                      transcendentals=int(8 * B),
                                      bytes_accessed=int(mlp_bytes)),
    )(base, weather, wpm, wpa, *m_pack, *d_pack)

    mi = mlp_out[0, 0]
    adv = mlp_out[1, 0]

    # ---------------- distance correlation (tiled, VMEM-flat) ----------------
    if B < 2:
        dcor = jnp.float32(0.0)
    else:
        tt = _pick_tile(B)
        n_t = B // tt
        dcor_flops = 4 * B * B * (base_dim + weather_dim) + 12 * B * B
        dcor_bytes = 4 * (2 * n_t * B * (base_dim + weather_dim)
                          + 2 * B * 128 + 8 * 128)

        scal, rsa, rsb = pl.pallas_call(
            _dcor_kernel,
            out_shape=(jax.ShapeDtypeStruct((8, 128), jnp.float32),
                       jax.ShapeDtypeStruct((B, 128), jnp.float32),
                       jax.ShapeDtypeStruct((B, 128), jnp.float32)),
            grid_spec=pltpu.PrefetchScalarGridSpec(
                num_scalar_prefetch=0,
                grid=(n_t, n_t),
                in_specs=[pl.BlockSpec((tt, base_dim), lambda i, j: (i, 0)),
                          pl.BlockSpec((tt, base_dim), lambda i, j: (j, 0)),
                          pl.BlockSpec((tt, weather_dim), lambda i, j: (i, 0)),
                          pl.BlockSpec((tt, weather_dim), lambda i, j: (j, 0))],
                out_specs=(pl.BlockSpec((8, 128), lambda i, j: (0, 0)),
                           pl.BlockSpec((tt, 128), lambda i, j: (i, 0)),
                           pl.BlockSpec((tt, 128), lambda i, j: (i, 0))),
            ),
            compiler_params=pltpu.CompilerParams(
                dimension_semantics=("arbitrary", "arbitrary")),
            cost_estimate=pl.CostEstimate(flops=int(dcor_flops),
                                          transcendentals=int(2 * B * B),
                                          bytes_accessed=int(dcor_bytes)),
        )(base, base, weather, weather)

        # O(B) / O(1) algebraic finalize (Szekely double-centering identity).
        n = jnp.float32(B)
        s_aa, s_bb, s_ab = scal[0, 0], scal[1, 0], scal[2, 0]
        ra = rsa[:, 0] / n          # row means of a
        rb = rsb[:, 0] / n          # row means of b
        abar = jnp.sum(ra) / n      # grand mean of a
        bbar = jnp.sum(rb) / n
        m_ab = s_ab / (n * n) - (2.0 / n) * jnp.dot(ra, rb) + abar * bbar
        m_aa = s_aa / (n * n) - (2.0 / n) * jnp.dot(ra, ra) + abar * abar
        m_bb = s_bb / (n * n) - (2.0 / n) * jnp.dot(rb, rb) + bbar * bbar
        dcov = jnp.sqrt(jnp.maximum(m_ab, 0.0))
        dva = jnp.sqrt(jnp.maximum(m_aa, 0.0))
        dvb = jnp.sqrt(jnp.maximum(m_bb, 0.0))
        denom = jnp.sqrt(dva * dvb)
        dcor = jnp.where((dva > 0.0) & (dvb > 0.0),
                         dcov / jnp.where(denom > 0.0, denom, 1.0), 0.0)

    total = ALPHA_MI * mi + ALPHA_ADV * adv + ALPHA_DCOR * dcor
    return {
        "total_causal_loss": total,
        "mi_loss": mi,
        "adversarial_loss": adv,
        "dcor_loss": dcor,
    }


def init_params(key, input_dim, mine_hidden=64, disc_hidden=64):
    """Deterministic nn.Linear-style init (uniform +/- 1/sqrt(fan_in))."""
    def linear(k, fan_in, fan_out):
        kw, kb = jax.random.split(k)
        bound = 1.0 / (fan_in ** 0.5)
        w = jax.random.uniform(kw, (fan_in, fan_out), jnp.float32, -bound, bound)
        b = jax.random.uniform(kb, (1, fan_out), jnp.float32, -bound, bound)
        return w, b

    keys = jax.random.split(key, 6)
    mw1, mb1 = linear(keys[0], input_dim, mine_hidden)
    mw2, mb2 = linear(keys[1], mine_hidden, mine_hidden)
    mw3, mb3 = linear(keys[2], mine_hidden, 1)
    dw1, db1 = linear(keys[3], input_dim, disc_hidden)
    dw2, db2 = linear(keys[4], disc_hidden, disc_hidden)
    dw3, db3 = linear(keys[5], disc_hidden, 1)
    return (mw1, mb1, mw2, mb2, mw3, mb3, dw1, db1, dw2, db2, dw3, db3)


if __name__ == "__main__":
    key = jax.random.PRNGKey(0)
    k_base, k_weather, k_params, k_perm = jax.random.split(key, 4)

    B, base_dim, weather_dim = 8, 16, 16
    base = jax.random.normal(k_base, (B, base_dim), jnp.float32)
    weather = jax.random.normal(k_weather, (B, weather_dim), jnp.float32)
    params = init_params(k_params, base_dim + weather_dim,
                         mine_hidden=64, disc_hidden=64)

    out = composite_causal_loss(base, weather, params, k_perm)
    out = jax.block_until_ready(out)
    print("KERNEL_OK")
</pallas_src>

<mosaic_0001>
module attributes {stable_mosaic.version = 11 : i64} {
  func.func @kernel(%arg0: i32, %arg1: memref<8x16xf32, #tpu.memory_space<vmem>>, %arg2: memref<8x16xf32, #tpu.memory_space<vmem>>, %arg3: memref<8x16xf32, #tpu.memory_space<vmem>>, %arg4: memref<8x16xf32, #tpu.memory_space<vmem>>, %arg5: memref<16x128xf32, #tpu.memory_space<vmem>>, %arg6: memref<16x128xf32, #tpu.memory_space<vmem>>, %arg7: memref<128x128xf32, #tpu.memory_space<vmem>>, %arg8: memref<8x128xf32, #tpu.memory_space<vmem>>, %arg9: memref<16x128xf32, #tpu.memory_space<vmem>>, %arg10: memref<16x128xf32, #tpu.memory_space<vmem>>, %arg11: memref<128x128xf32, #tpu.memory_space<vmem>>, %arg12: memref<8x128xf32, #tpu.memory_space<vmem>>, %arg13: memref<8x128xf32, #tpu.memory_space<vmem>>, %arg14: memref<8x128xf32, #tpu.memory_space<vmem>>) attributes {dimension_semantics = [#tpu.dimension_semantics<arbitrary>], iteration_bounds = array<i64: 1>, scalar_prefetch = 0 : i64, scratch_operands = 1 : i64, tpu.core_type = #tpu.core_type<tc>, window_params = [{transform_indices = @transform_0, window_bounds = array<i64: 8, 16>}, {transform_indices = @transform_1, window_bounds = array<i64: 8, 16>}, {transform_indices = @transform_2, window_bounds = array<i64: 8, 16>}, {transform_indices = @transform_3, window_bounds = array<i64: 8, 16>}, {pipeline_mode = #tpu.pipeline_mode<synchronous>, transform_indices = @transform_4, window_bounds = array<i64: 16, 128>}, {pipeline_mode = #tpu.pipeline_mode<synchronous>, transform_indices = @transform_5, window_bounds = array<i64: 16, 128>}, {pipeline_mode = #tpu.pipeline_mode<synchronous>, transform_indices = @transform_6, window_bounds = array<i64: 128, 128>}, {pipeline_mode = #tpu.pipeline_mode<synchronous>, transform_indices = @transform_7, window_bounds = array<i64: 8, 128>}, {pipeline_mode = #tpu.pipeline_mode<synchronous>, transform_indices = @transform_8, window_bounds = array<i64: 16, 128>}, {pipeline_mode = #tpu.pipeline_mode<synchronous>, transform_indices = @transform_9, window_bounds = array<i64: 16, 128>}, {pipeline_mode = #tpu.pipeline_mode<synchronous>, transform_indices = @transform_10, window_bounds = array<i64: 128, 128>}, {pipeline_mode = #tpu.pipeline_mode<synchronous>, transform_indices = @transform_11, window_bounds = array<i64: 8, 128>}, {pipeline_mode = #tpu.pipeline_mode<synchronous>, transform_indices = @transform_12, window_bounds = array<i64: 8, 128>}]} {
    %0 = tpu.iota {dimensions = array<i32: 0>} : vector<8x128xi32>
    %c0_i32 = arith.constant 0 : i32
    %1 = arith.cmpi eq, %arg0, %c0_i32 : i32
    %2 = arith.extui %1 : i1 to i32
    %c0_i32_0 = arith.constant 0 : i32
    %3 = arith.cmpi ne, %2, %c0_i32_0 : i32
    scf.if %3 {
      %c1_i32_59 = arith.constant 1 : i32
      %165 = vector.broadcast %c1_i32_59 : i32 to vector<8x128xi32>
      %166 = arith.cmpi eq, %0, %165 : vector<8x128xi32>
      %cst_60 = arith.constant -1.000000e+30 : f32
      %cst_61 = arith.constant 0.000000e+00 : f32
      %167 = vector.broadcast %cst_60 : f32 to vector<8x128xf32>
      %168 = vector.broadcast %cst_61 : f32 to vector<8x128xf32>
      %169 = arith.select %166, %167, %168 : vector<8x128xi1>, vector<8x128xf32>
      %c0_62 = arith.constant 0 : index
      %c0_63 = arith.constant 0 : index
      %170 = vector.load %arg14[%c0_62, %c0_63] : memref<8x128xf32, #tpu.memory_space<vmem>>, vector<8x128xf32>
      tpu.vector_store %arg14[%c0_62, %c0_63], %169 {strides = array<i32>} : memref<8x128xf32, #tpu.memory_space<vmem>>, vector<8x128xf32>,
    } else {
    }
    %c0 = arith.constant 0 : index
    %c0_1 = arith.constant 0 : index
    %4 = vector.load %arg1[%c0, %c0_1] : memref<8x16xf32, #tpu.memory_space<vmem>>, vector<8x16xf32>
    %c0_2 = arith.constant 0 : index
    %c0_3 = arith.constant 0 : index
    %5 = vector.load %arg2[%c0_2, %c0_3] : memref<8x16xf32, #tpu.memory_space<vmem>>, vector<8x16xf32>
    %c0_4 = arith.constant 0 : index
    %c0_5 = arith.constant 0 : index
    %6 = vector.load %arg3[%c0_4, %c0_5] : memref<8x16xf32, #tpu.memory_space<vmem>>, vector<8x16xf32>
    %c0_6 = arith.constant 0 : index
    %c0_7 = arith.constant 0 : index
    %7 = vector.load %arg4[%c0_6, %c0_7] : memref<8x16xf32, #tpu.memory_space<vmem>>, vector<8x16xf32>
    %c0_8 = arith.constant 0 : index
    %c0_9 = arith.constant 0 : index
    %8 = vector.load %arg5[%c0_8, %c0_9] : memref<16x128xf32, #tpu.memory_space<vmem>>, vector<16x128xf32>
    %c0_10 = arith.constant 0 : index
    %c0_11 = arith.constant 0 : index
    %9 = vector.load %arg6[%c0_10, %c0_11] : memref<16x128xf32, #tpu.memory_space<vmem>>, vector<16x128xf32>
    %c0_12 = arith.constant 0 : index
    %c0_13 = arith.constant 0 : index
    %10 = vector.load %arg7[%c0_12, %c0_13] : memref<128x128xf32, #tpu.memory_space<vmem>>, vector<128x128xf32>
    %c0_14 = arith.constant 0 : index
    %c0_15 = arith.constant 0 : index
    %11 = vector.load %arg8[%c0_14, %c0_15] : memref<8x128xf32, #tpu.memory_space<vmem>>, vector<8x128xf32>
    %12 = vector.extract_strided_slice %11 {offsets = [0, 0], sizes = [1, 128], strides = [1, 1]} : vector<8x128xf32> to vector<1x128xf32>
    %13 = vector.extract_strided_slice %11 {offsets = [1, 0], sizes = [1, 128], strides = [1, 1]} : vector<8x128xf32> to vector<1x128xf32>
    %14 = vector.extract_strided_slice %11 {offsets = [2, 0], sizes = [1, 128], strides = [1, 1]} : vector<8x128xf32> to vector<1x128xf32>
    %15 = vector.extract_strided_slice %11 {offsets = [3, 0], sizes = [1, 1], strides = [1, 1]} : vector<8x128xf32> to vector<1x1xf32>
    %16 = vector.extract %15[0, 0] : f32 from vector<1x1xf32>
    %cst = arith.constant dense<0.000000e+00> : vector<8x128xf32>
    %17 = tpu.matmul %4, %8, %cst {dimension_numbers = #tpu.dot_dimension_numbers<[1], [0], [0], [1], [0, 0, 1, 1], [], []>} : vector<8x16xf32>, vector<16x128xf32>, vector<8x128xf32> -> vector<8x128xf32>
    %cst_16 = arith.constant dense<0.000000e+00> : vector<8x128xf32>
    %18 = tpu.matmul %5, %9, %cst_16 {dimension_numbers = #tpu.dot_dimension_numbers<[1], [0], [0], [1], [0, 0, 1, 1], [], []>} : vector<8x16xf32>, vector<16x128xf32>, vector<8x128xf32> -> vector<8x128xf32>
    %19 = arith.addf %17, %18 : vector<8x128xf32>
    %cst_17 = arith.constant dense<0.000000e+00> : vector<8x128xf32>
    %20 = tpu.matmul %6, %9, %cst_17 {dimension_numbers = #tpu.dot_dimension_numbers<[1], [0], [0], [1], [0, 0, 1, 1], [], []>} : vector<8x16xf32>, vector<16x128xf32>, vector<8x128xf32> -> vector<8x128xf32>
    %21 = arith.addf %17, %20 : vector<8x128xf32>
    %22 = tpu.concatenate %19, %21 in 0 : vector<8x128xf32>, vector<8x128xf32> -> vector<16x128xf32>
    %23 = vector.broadcast %12 : vector<1x128xf32> to vector<16x128xf32>
    %24 = arith.addf %22, %23 : vector<16x128xf32>
    %cst_18 = arith.constant 0.000000e+00 : f32
    %25 = vector.broadcast %cst_18 : f32 to vector<16x128xf32>
    %26 = arith.maximumf %24, %25 : vector<16x128xf32>
    %cst_19 = arith.constant dense<0.000000e+00> : vector<16x128xf32>
    %27 = tpu.matmul %26, %10, %cst_19 {dimension_numbers = #tpu.dot_dimension_numbers<[1], [0], [0], [1], [0, 0, 1, 1], [], []>} : vector<16x128xf32>, vector<128x128xf32>, vector<16x128xf32> -> vector<16x128xf32>
    %28 = vector.broadcast %13 : vector<1x128xf32> to vector<16x128xf32>
    %29 = arith.addf %27, %28 : vector<16x128xf32>
    %cst_20 = arith.constant 0.000000e+00 : f32
    %30 = vector.broadcast %cst_20 : f32 to vector<16x128xf32>
    %31 = arith.maximumf %29, %30 : vector<16x128xf32>
    %32 = vector.broadcast %14 : vector<1x128xf32> to vector<16x128xf32>
    %33 = arith.mulf %31, %32 : vector<16x128xf32>
    %cst_21 = arith.constant dense<0.000000e+00> : vector<16xf32>
    %34 = vector.multi_reduction <add>, %33, %cst_21 [1] : vector<16x128xf32> to vector<16xf32>
    %35 = vector.shape_cast %34 : vector<16xf32> to vector<16x1xf32>
    %36 = vector.broadcast %16 : f32 to vector<16x1xf32>
    %37 = arith.addf %35, %36 : vector<16x1xf32>
    %38 = vector.extract_strided_slice %37 {offsets = [0, 0], sizes = [8, 1], strides = [1, 1]} : vector<16x1xf32> to vector<8x1xf32>
    %39 = vector.extract_strided_slice %37 {offsets = [8, 0], sizes = [8, 1], strides = [1, 1]} : vector<16x1xf32> to vector<8x1xf32>
    %c0_22 = arith.constant 0 : index
    %c0_23 = arith.constant 0 : index
    %40 = vector.load %arg9[%c0_22, %c0_23] : memref<16x128xf32, #tpu.memory_space<vmem>>, vector<16x128xf32>
    %c0_24 = arith.constant 0 : index
    %c0_25 = arith.constant 0 : index
    %41 = vector.load %arg10[%c0_24, %c0_25] : memref<16x128xf32, #tpu.memory_space<vmem>>, vector<16x128xf32>
    %c0_26 = arith.constant 0 : index
    %c0_27 = arith.constant 0 : index
    %42 = vector.load %arg11[%c0_26, %c0_27] : memref<128x128xf32, #tpu.memory_space<vmem>>, vector<128x128xf32>
    %c0_28 = arith.constant 0 : index
    %c0_29 = arith.constant 0 : index
    %43 = vector.load %arg12[%c0_28, %c0_29] : memref<8x128xf32, #tpu.memory_space<vmem>>, vector<8x128xf32>
    %44 = vector.extract_strided_slice %43 {offsets = [0, 0], sizes = [1, 128], strides = [1, 1]} : vector<8x128xf32> to vector<1x128xf32>
    %45 = vector.extract_strided_slice %43 {offsets = [1, 0], sizes = [1, 128], strides = [1, 1]} : vector<8x128xf32> to vector<1x128xf32>
    %46 = vector.extract_strided_slice %43 {offsets = [2, 0], sizes = [1, 128], strides = [1, 1]} : vector<8x128xf32> to vector<1x128xf32>
    %47 = vector.extract_strided_slice %43 {offsets = [3, 0], sizes = [1, 1], strides = [1, 1]} : vector<8x128xf32> to vector<1x1xf32>
    %48 = vector.extract %47[0, 0] : f32 from vector<1x1xf32>
    %cst_30 = arith.constant dense<0.000000e+00> : vector<8x128xf32>
    %49 = tpu.matmul %4, %40, %cst_30 {dimension_numbers = #tpu.dot_dimension_numbers<[1], [0], [0], [1], [0, 0, 1, 1], [], []>} : vector<8x16xf32>, vector<16x128xf32>, vector<8x128xf32> -> vector<8x128xf32>
    %cst_31 = arith.constant dense<0.000000e+00> : vector<8x128xf32>
    %50 = tpu.matmul %5, %41, %cst_31 {dimension_numbers = #tpu.dot_dimension_numbers<[1], [0], [0], [1], [0, 0, 1, 1], [], []>} : vector<8x16xf32>, vector<16x128xf32>, vector<8x128xf32> -> vector<8x128xf32>
    %51 = arith.addf %49, %50 : vector<8x128xf32>
    %cst_32 = arith.constant dense<0.000000e+00> : vector<8x128xf32>
    %52 = tpu.matmul %7, %41, %cst_32 {dimension_numbers = #tpu.dot_dimension_numbers<[1], [0], [0], [1], [0, 0, 1, 1], [], []>} : vector<8x16xf32>, vector<16x128xf32>, vector<8x128xf32> -> vector<8x128xf32>
    %53 = arith.addf %49, %52 : vector<8x128xf32>
    %54 = tpu.concatenate %51, %53 in 0 : vector<8x128xf32>, vector<8x128xf32> -> vector<16x128xf32>
    %55 = vector.broadcast %44 : vector<1x128xf32> to vector<16x128xf32>
    %56 = arith.addf %54, %55 : vector<16x128xf32>
    %cst_33 = arith.constant 0.000000e+00 : f32
    %57 = vector.broadcast %cst_33 : f32 to vector<16x128xf32>
    %58 = arith.maximumf %56, %57 : vector<16x128xf32>
    %cst_34 = arith.constant dense<0.000000e+00> : vector<16x128xf32>
    %59 = tpu.matmul %58, %42, %cst_34 {dimension_numbers = #tpu.dot_dimension_numbers<[1], [0], [0], [1], [0, 0, 1, 1], [], []>} : vector<16x128xf32>, vector<128x128xf32>, vector<16x128xf32> -> vector<16x128xf32>
    %60 = vector.broadcast %45 : vector<1x128xf32> to vector<16x128xf32>
    %61 = arith.addf %59, %60 : vector<16x128xf32>
    %cst_35 = arith.constant 0.000000e+00 : f32
    %62 = vector.broadcast %cst_35 : f32 to vector<16x128xf32>
    %63 = arith.maximumf %61, %62 : vector<16x128xf32>
    %64 = vector.broadcast %46 : vector<1x128xf32> to vector<16x128xf32>
    %65 = arith.mulf %63, %64 : vector<16x128xf32>
    %cst_36 = arith.constant dense<0.000000e+00> : vector<16xf32>
    %66 = vector.multi_reduction <add>, %65, %cst_36 [1] : vector<16x128xf32> to vector<16xf32>
    %67 = vector.shape_cast %66 : vector<16xf32> to vector<16x1xf32>
    %68 = vector.broadcast %48 : f32 to vector<16x1xf32>
    %69 = arith.addf %67, %68 : vector<16x1xf32>
    %70 = vector.extract_strided_slice %69 {offsets = [0, 0], sizes = [8, 1], strides = [1, 1]} : vector<16x1xf32> to vector<8x1xf32>
    %71 = vector.extract_strided_slice %69 {offsets = [8, 0], sizes = [8, 1], strides = [1, 1]} : vector<16x1xf32> to vector<8x1xf32>
    %c0_37 = arith.constant 0 : index
    %c0_38 = arith.constant 0 : index
    %72 = vector.load %arg14[%c0_37, %c0_38] : memref<8x128xf32, #tpu.memory_space<vmem>>, vector<8x128xf32>
    %73 = vector.extract_strided_slice %72 {offsets = [0, 0], sizes = [1, 1], strides = [1, 1]} : vector<8x128xf32> to vector<1x1xf32>
    %74 = vector.extract %73[0, 0] : f32 from vector<1x1xf32>
    %75 = vector.shape_cast %38 : vector<8x1xf32> to vector<1x8x1xf32>
    %cst_39 = arith.constant dense<0.000000e+00> : vector<1xf32>
    %76 = vector.multi_reduction <add>, %75, %cst_39 [1, 2] : vector<1x8x1xf32> to vector<1xf32>
    %77 = vector.shape_cast %76 : vector<1xf32> to vector<1x1x1xf32>
    %78 = vector.extract %77[0, 0, 0] : f32 from vector<1x1x1xf32>
    %79 = arith.addf %74, %78 : f32
    %80 = vector.extract_strided_slice %72 {offsets = [1, 0], sizes = [1, 1], strides = [1, 1]} : vector<8x128xf32> to vector<1x1xf32>
    %81 = vector.extract %80[0, 0] : f32 from vector<1x1xf32>
    %82 = vector.shape_cast %39 : vector<8x1xf32> to vector<1x8x1xf32>
    %cst_40 = arith.constant dense<0xFF800000> : vector<1xf32>
    %83 = vector.multi_reduction <maximumf>, %82, %cst_40 [1, 2] : vector<1x8x1xf32> to vector<1xf32>
    %84 = vector.shape_cast %83 : vector<1xf32> to vector<1x1x1xf32>
    %85 = vector.extract %84[0, 0, 0] : f32 from vector<1x1x1xf32>
    %86 = arith.maximumf %81, %85 : f32
    %87 = vector.extract_strided_slice %72 {offsets = [2, 0], sizes = [1, 1], strides = [1, 1]} : vector<8x128xf32> to vector<1x1xf32>
    %88 = vector.extract %87[0, 0] : f32 from vector<1x1xf32>
    %89 = arith.subf %81, %86 : f32
    %90 = math.exp %89 : f32
    %91 = arith.mulf %88, %90 : f32
    %92 = vector.broadcast %86 : f32 to vector<8x1xf32>
    %93 = arith.subf %39, %92 : vector<8x1xf32>
    %94 = math.exp %93 : vector<8x1xf32>
    %95 = vector.shape_cast %94 : vector<8x1xf32> to vector<1x8x1xf32>
    %cst_41 = arith.constant dense<0.000000e+00> : vector<1xf32>
    %96 = vector.multi_reduction <add>, %95, %cst_41 [1, 2] : vector<1x8x1xf32> to vector<1xf32>
    %97 = vector.shape_cast %96 : vector<1xf32> to vector<1x1x1xf32>
    %98 = vector.extract %97[0, 0, 0] : f32 from vector<1x1x1xf32>
    %99 = arith.addf %91, %98 : f32
    %100 = vector.extract_strided_slice %72 {offsets = [3, 0], sizes = [1, 1], strides = [1, 1]} : vector<8x128xf32> to vector<1x1xf32>
    %101 = vector.extract %100[0, 0] : f32 from vector<1x1xf32>
    %cst_42 = arith.constant 0.000000e+00 : f32
    %102 = vector.broadcast %cst_42 : f32 to vector<8x1xf32>
    %103 = arith.maximumf %70, %102 : vector<8x1xf32>
    %104 = math.absf %70 : vector<8x1xf32>
    %cst_43 = arith.constant 0.000000e+00 : f32
    %105 = vector.broadcast %cst_43 : f32 to vector<8x1xf32>
    %106 = arith.subf %105, %104 : vector<8x1xf32>
    %107 = math.exp %106 : vector<8x1xf32>
    %cst_44 = arith.constant 1.000000e+00 : f32
    %108 = vector.broadcast %cst_44 : f32 to vector<8x1xf32>
    %109 = arith.addf %108, %107 : vector<8x1xf32>
    %110 = math.log %109 : vector<8x1xf32>
    %111 = arith.addf %103, %110 : vector<8x1xf32>
    %cst_45 = arith.constant 1.000000e+02 : f32
    %112 = vector.broadcast %cst_45 : f32 to vector<8x1xf32>
    %113 = arith.minimumf %111, %112 : vector<8x1xf32>
    %114 = vector.shape_cast %113 : vector<8x1xf32> to vector<1x8x1xf32>
    %cst_46 = arith.constant dense<0.000000e+00> : vector<1xf32>
    %115 = vector.multi_reduction <add>, %114, %cst_46 [1, 2] : vector<1x8x1xf32> to vector<1xf32>
    %116 = vector.shape_cast %115 : vector<1xf32> to vector<1x1x1xf32>
    %117 = vector.extract %116[0, 0, 0] : f32 from vector<1x1x1xf32>
    %118 = arith.addf %101, %117 : f32
    %119 = vector.extract_strided_slice %72 {offsets = [4, 0], sizes = [1, 1], strides = [1, 1]} : vector<8x128xf32> to vector<1x1xf32>
    %120 = vector.extract %119[0, 0] : f32 from vector<1x1xf32>
    %cst_47 = arith.constant 0.000000e+00 : f32
    %121 = vector.broadcast %cst_47 : f32 to vector<8x1xf32>
    %122 = arith.subf %121, %71 : vector<8x1xf32>
    %cst_48 = arith.constant 0.000000e+00 : f32
    %123 = vector.broadcast %cst_48 : f32 to vector<8x1xf32>
    %124 = arith.maximumf %122, %123 : vector<8x1xf32>
    %125 = math.absf %122 : vector<8x1xf32>
    %cst_49 = arith.constant 0.000000e+00 : f32
    %126 = vector.broadcast %cst_49 : f32 to vector<8x1xf32>
    %127 = arith.subf %126, %125 : vector<8x1xf32>
    %128 = math.exp %127 : vector<8x1xf32>
    %cst_50 = arith.constant 1.000000e+00 : f32
    %129 = vector.broadcast %cst_50 : f32 to vector<8x1xf32>
    %130 = arith.addf %129, %128 : vector<8x1xf32>
    %131 = math.log %130 : vector<8x1xf32>
    %132 = arith.addf %124, %131 : vector<8x1xf32>
    %cst_51 = arith.constant 1.000000e+02 : f32
    %133 = vector.broadcast %cst_51 : f32 to vector<8x1xf32>
    %134 = arith.minimumf %132, %133 : vector<8x1xf32>
    %135 = vector.shape_cast %134 : vector<8x1xf32> to vector<1x8x1xf32>
    %cst_52 = arith.constant dense<0.000000e+00> : vector<1xf32>
    %136 = vector.multi_reduction <add>, %135, %cst_52 [1, 2] : vector<1x8x1xf32> to vector<1xf32>
    %137 = vector.shape_cast %136 : vector<1xf32> to vector<1x1x1xf32>
    %138 = vector.extract %137[0, 0, 0] : f32 from vector<1x1x1xf32>
    %139 = arith.addf %120, %138 : f32
    %c0_i32_53 = arith.constant 0 : i32
    %140 = vector.broadcast %c0_i32_53 : i32 to vector<8x128xi32>
    %141 = arith.cmpi eq, %0, %140 : vector<8x128xi32>
    %c1_i32 = arith.constant 1 : i32
    %142 = vector.broadcast %c1_i32 : i32 to vector<8x128xi32>
    %143 = arith.cmpi eq, %0, %142 : vector<8x128xi32>
    %c2_i32 = arith.constant 2 : i32
    %144 = vector.broadcast %c2_i32 : i32 to vector<8x128xi32>
    %145 = arith.cmpi eq, %0, %144 : vector<8x128xi32>
    %c3_i32 = arith.constant 3 : i32
    %146 = vector.broadcast %c3_i32 : i32 to vector<8x128xi32>
    %147 = arith.cmpi eq, %0, %146 : vector<8x128xi32>
    %c4_i32 = arith.constant 4 : i32
    %148 = vector.broadcast %c4_i32 : i32 to vector<8x128xi32>
    %149 = arith.cmpi eq, %0, %148 : vector<8x128xi32>
    %cst_54 = arith.constant 0.000000e+00 : f32
    %150 = vector.broadcast %139 : f32 to vector<8x128xf32>
    %151 = vector.broadcast %cst_54 : f32 to vector<8x128xf32>
    %152 = arith.select %149, %150, %151 : vector<8x128xi1>, vector<8x128xf32>
    %153 = vector.broadcast %118 : f32 to vector<8x128xf32>
    %154 = arith.select %147, %153, %152 : vector<8x128xi1>, vector<8x128xf32>
    %155 = vector.broadcast %99 : f32 to vector<8x128xf32>
    %156 = arith.select %145, %155, %154 : vector<8x128xi1>, vector<8x128xf32>
    %157 = vector.broadcast %86 : f32 to vector<8x128xf32>
    %158 = arith.select %143, %157, %156 : vector<8x128xi1>, vector<8x128xf32>
    %159 = vector.broadcast %79 : f32 to vector<8x128xf32>
    %160 = arith.select %141, %159, %158 : vector<8x128xi1>, vector<8x128xf32>
    %c0_55 = arith.constant 0 : index
    %c0_56 = arith.constant 0 : index
    %161 = vector.load %arg14[%c0_55, %c0_56] : memref<8x128xf32, #tpu.memory_space<vmem>>, vector<8x128xf32>
    tpu.vector_store %arg14[%c0_55, %c0_56], %160 {strides = array<i32>} : memref<8x128xf32, #tpu.memory_space<vmem>>, vector<8x128xf32>,
    %c0_i32_57 = arith.constant 0 : i32
    %162 = arith.cmpi eq, %arg0, %c0_i32_57 : i32
    %163 = arith.extui %162 : i1 to i32
    %c0_i32_58 = arith.constant 0 : i32
    %164 = arith.cmpi ne, %163, %c0_i32_58 : i32
    scf.if %164 {
      %cst_59 = arith.constant 8.000000e+00 : f32
      %165 = arith.divf %79, %cst_59 : f32
      %166 = math.log %99 : f32
      %167 = arith.addf %86, %166 : f32
      %cst_60 = arith.constant 8.000000e+00 : f32
      %168 = math.log %cst_60 : f32
      %169 = arith.subf %167, %168 : f32
      %cst_61 = arith.constant -18.420681 : f32
      %170 = arith.maximumf %169, %cst_61 : f32
      %171 = arith.subf %169, %170 : f32
      %172 = math.exp %171 : f32
      %cst_62 = arith.constant -18.420681 : f32
      %173 = arith.subf %cst_62, %170 : f32
      %174 = math.exp %173 : f32
      %175 = arith.addf %172, %174 : f32
      %176 = math.log %175 : f32
      %177 = arith.addf %170, %176 : f32
      %178 = arith.subf %165, %177 : f32
      %cst_63 = arith.constant 8.000000e+00 : f32
      %179 = arith.divf %118, %cst_63 : f32
      %cst_64 = arith.constant 8.000000e+00 : f32
      %180 = arith.divf %139, %cst_64 : f32
      %181 = arith.addf %179, %180 : f32
      %182 = tpu.iota {dimensions = array<i32: 0>} : vector<8x128xi32>
      %c0_i32_65 = arith.constant 0 : i32
      %183 = vector.broadcast %c0_i32_65 : i32 to vector<8x128xi32>
      %184 = arith.cmpi eq, %182, %183 : vector<8x128xi32>
      %c1_i32_66 = arith.constant 1 : i32
      %185 = vector.broadcast %c1_i32_66 : i32 to vector<8x128xi32>
      %186 = arith.cmpi eq, %182, %185 : vector<8x128xi32>
      %cst_67 = arith.constant 0.000000e+00 : f32
      %187 = vector.broadcast %181 : f32 to vector<8x128xf32>
      %188 = vector.broadcast %cst_67 : f32 to vector<8x128xf32>
      %189 = arith.select %186, %187, %188 : vector<8x128xi1>, vector<8x128xf32>
      %190 = vector.broadcast %178 : f32 to vector<8x128xf32>
      %191 = arith.select %184, %190, %189 : vector<8x128xi1>, vector<8x128xf32>
      %c0_68 = arith.constant 0 : index
      %c0_69 = arith.constant 0 : index
      %192 = vector.load %arg13[%c0_68, %c0_69] : memref<8x128xf32, #tpu.memory_space<vmem>>, vector<8x128xf32>
      tpu.vector_store %arg13[%c0_68, %c0_69], %191 {strides = array<i32>} : memref<8x128xf32, #tpu.memory_space<vmem>>, vector<8x128xf32>,
    } else {
    }
    return
  }
  func.func @transform_0(%arg0: i32) -> (i32, i32) {
    %c0_i32 = arith.constant 0 : i32
    %c0_i32_0 = arith.constant 0 : i32
    return %arg0, %c0_i32 : i32, i32
  }
  func.func @transform_1(%arg0: i32) -> (i32, i32) {
    %c0_i32 = arith.constant 0 : i32
    %c0_i32_0 = arith.constant 0 : i32
    return %arg0, %c0_i32 : i32, i32
  }
  func.func @transform_2(%arg0: i32) -> (i32, i32) {
    %c0_i32 = arith.constant 0 : i32
    %c0_i32_0 = arith.constant 0 : i32
    return %arg0, %c0_i32 : i32, i32
  }
  func.func @transform_3(%arg0: i32) -> (i32, i32) {
    %c0_i32 = arith.constant 0 : i32
    %c0_i32_0 = arith.constant 0 : i32
    return %arg0, %c0_i32 : i32, i32
  }
  func.func @transform_4(%arg0: i32) -> (i32, i32) {
    %c0_i32 = arith.constant 0 : i32
    %c0_i32_0 = arith.constant 0 : i32
    %c0_i32_1 = arith.constant 0 : i32
    return %c0_i32, %c0_i32_0 : i32, i32
  }
  func.func @transform_5(%arg0: i32) -> (i32, i32) {
    %c0_i32 = arith.constant 0 : i32
    %c0_i32_0 = arith.constant 0 : i32
    %c0_i32_1 = arith.constant 0 : i32
    return %c0_i32, %c0_i32_0 : i32, i32
  }
  func.func @transform_6(%arg0: i32) -> (i32, i32) {
    %c0_i32 = arith.constant 0 : i32
    %c0_i32_0 = arith.constant 0 : i32
    %c0_i32_1 = arith.constant 0 : i32
    return %c0_i32, %c0_i32_0 : i32, i32
  }
  func.func @transform_7(%arg0: i32) -> (i32, i32) {
    %c0_i32 = arith.constant 0 : i32
    %c0_i32_0 = arith.constant 0 : i32
    %c0_i32_1 = arith.constant 0 : i32
    return %c0_i32, %c0_i32_0 : i32, i32
  }
  func.func @transform_8(%arg0: i32) -> (i32, i32) {
    %c0_i32 = arith.constant 0 : i32
    %c0_i32_0 = arith.constant 0 : i32
    %c0_i32_1 = arith.constant 0 : i32
    return %c0_i32, %c0_i32_0 : i32, i32
  }
  func.func @transform_9(%arg0: i32) -> (i32, i32) {
    %c0_i32 = arith.constant 0 : i32
    %c0_i32_0 = arith.constant 0 : i32
    %c0_i32_1 = arith.constant 0 : i32
    return %c0_i32, %c0_i32_0 : i32, i32
  }
  func.func @transform_10(%arg0: i32) -> (i32, i32) {
    %c0_i32 = arith.constant 0 : i32
    %c0_i32_0 = arith.constant 0 : i32
    %c0_i32_1 = arith.constant 0 : i32
    return %c0_i32, %c0_i32_0 : i32, i32
  }
  func.func @transform_11(%arg0: i32) -> (i32, i32) {
    %c0_i32 = arith.constant 0 : i32
    %c0_i32_0 = arith.constant 0 : i32
    %c0_i32_1 = arith.constant 0 : i32
    return %c0_i32, %c0_i32_0 : i32, i32
  }
  func.func @transform_12(%arg0: i32) -> (i32, i32) {
    %c0_i32 = arith.constant 0 : i32
    %c0_i32_0 = arith.constant 0 : i32
    %c0_i32_1 = arith.constant 0 : i32
    return %c0_i32, %c0_i32_0 : i32, i32
  }
}

</mosaic_0001>

<bundles_post_ra>
// kernel: tpu_custom_call.1
= control target key start
LH: loop header
LB: loop body
LE: loop exit
PB: predicated region body
PF: predicated region fallthrough
CT: control target
= control target key end

     0   :  { %17 = vsyncpa [#allocation4], 0  ;;  %s1766_s0 = inlined_call_operand.hbm [shape: f32[8,16], index: 0, kind: input, shape index: {}]   ;;  %s1767_s1 = inlined_call_operand.hbm [shape: f32[8,16], index: 1, kind: input, shape index: {}]   ;;  %s1768_s2 = inlined_call_operand.hbm [shape: f32[8,16], index: 2, kind: input, shape index: {}]   ;;  %s1769_s3 = inlined_call_operand.hbm [shape: f32[8,16], index: 3, kind: input, shape index: {}]   ;;  %s1770_s4 = inlined_call_operand.hbm [shape: f32[16,128], index: 4, kind: input, shape index: {}]   ;;  %s1771_s5 = inlined_call_operand.hbm [shape: f32[16,128], index: 5, kind: input, shape index: {}]   ;;  %s1772_s6 = inlined_call_operand.hbm [shape: f32[128,128], index: 6, kind: input, shape index: {}]   ;;  %s1773_s7 = inlined_call_operand.hbm [shape: f32[8,128], index: 7, kind: input, shape index: {}]   ;;  %s1774_s8 = inlined_call_operand.hbm [shape: f32[16,128], index: 8, kind: input, shape index: {}]   ;;  %s1775_s9 = inlined_call_operand.vmem [shape: f32[16,128], index: 9, kind: input, shape index: {}]   ;;  %s1776_s10 = inlined_call_operand.hbm [shape: f32[128,128], index: 10, kind: input, shape index: {}]   ;;  %s1777_s11 = inlined_call_operand.hbm [shape: f32[8,128], index: 11, kind: input, shape index: {}]   ;;  %s1778_s12 = inlined_call_operand.hbm [shape: f32[8,128], index: 12, kind: output, shape index: {}]  }
   0x1   :  { %18 = vsyncpa [#allocation7], 0 }
   0x2   :  { %19 = vsyncpa [#allocation10], 0 }
   0x3   :  { %20 = vsyncpa [#allocation13], 0 }
   0x4   :  { %21 = vsyncpa [#allocation16], 0 }
   0x5   :  { %22 = vsyncpa [#allocation19], 0 }
   0x6   :  { %23 = vsyncpa [#allocation5], 0  ;;  %s1548_s21 = smov [#allocation6]   ;;  %s1549_s23 = smov [#allocation9]  }
   0x7   :  { %s40_s22 = sshll.u32 %s1548_s21, 4  ;;  %s60_s24 = sshll.u32 %s1549_s23, 4  ;;  %s41_s22 = int_to_ptr.vmem [resolvable:$true] %s40_s22  ;;  %s61_s24 = int_to_ptr.vmem [resolvable:$true] %s60_s24 }
   0x8   :  { %s1302_s25 = scalar_lea.vmem %s41_s22, 128  ;;  %p1307_p1 = scmp.lt.s32.totalorder %s41_s22, %s41_s22 }
   0x9   :  { %p1303_p0 = scmp.ne.s32.totalorder %s41_s22, %s1302_s25  ;;  %p1308_p2 = scmp.lt.s32.totalorder %s1302_s25, %s1302_s25 }
   0xb   :  { %p1309_p3 = por %p1308_p2, %p1307_p1 }
   0xd   :  { %p1310_p4 = pnand %p1309_p3, %p1303_p0 }
   0xf   :  { %1313 = shalt.err (!%p1310_p4)
}
  0x10   :  { %43 = dma.hbm_to_vmem [thread:$0]  %s1767_s1, 128, %s41_s22, [#allocation7]  }
  0x11   :  { %s1322_s28 = scalar_lea.vmem %s61_s24, 128  ;;  %p1327_p6 = scmp.lt.s32.totalorder %s61_s24, %s61_s24 }
  0x12   :  { %p1323_p5 = scmp.ne.s32.totalorder %s61_s24, %s1322_s28  ;;  %p1328_p7 = scmp.lt.s32.totalorder %s1322_s28, %s1322_s28 }
  0x14   :  { %p1329_p8 = por %p1328_p7, %p1327_p6 }
  0x16   :  { %p1330_p9 = pnand %p1329_p8, %p1323_p5 }
  0x18   :  { %1333 = shalt.err (!%p1330_p9)
}
  0x19   :  { %63 = dma.hbm_to_vmem [thread:$0]  %s1769_s3, 128, %s61_s24, [#allocation10]  }
  0x1a   :  { %s1550_s13 = smov [#allocation12]   ;;  %s1551_s15 = smov [#allocation15]  }
  0x1b   :  { %s81_s14 = sshll.u32 %s1550_s13, 4  ;;  %s106_s16 = sshll.u32 %s1551_s15, 4  ;;  %s82_s14 = int_to_ptr.vmem [resolvable:$true] %s81_s14  ;;  %s107_s16 = int_to_ptr.vmem [resolvable:$true] %s106_s16 }
  0x1c   :  { %s1342_s17 = scalar_lea.vmem %s82_s14, 256  ;;  %p1347_p11 = scmp.lt.s32.totalorder %s82_s14, %s82_s14 }
  0x1d   :  { %p1343_p10 = scmp.ne.s32.totalorder %s82_s14, %s1342_s17  ;;  %p1348_p12 = scmp.lt.s32.totalorder %s1342_s17, %s1342_s17 }
  0x1f   :  { %p1349_p13 = por %p1348_p12, %p1347_p11 }
  0x21   :  { %p1350_p0 = pnand %p1349_p13, %p1343_p10 }
  0x23   :  { %1353 = shalt.err (!%p1350_p0)
}
  0x24   :  { %s1552_s1 = smov 128   ;;  %s1553_s18 = smov 8  }
  0x25   :  { %87 = dma.hbm_to_vmem [thread:$0]  %s1771_s5, 256, %s82_s14, [#allocation13], %s1552_s1, %s1552_s1, %s1553_s18  }
  0x26   :  { %s1362_s20 = scalar_lea.vmem %s107_s16, 128  ;;  %p1367_p2 = scmp.lt.s32.totalorder %s107_s16, %s107_s16 }
  0x27   :  { %p1363_p1 = scmp.ne.s32.totalorder %s107_s16, %s1362_s20  ;;  %p1368_p3 = scmp.lt.s32.totalorder %s1362_s20, %s1362_s20 }
  0x29   :  { %p1369_p4 = por %p1368_p3, %p1367_p2 }
  0x2b   :  { %p1370_p5 = pnand %p1369_p4, %p1363_p1 }
  0x2d   :  { %1373 = shalt.err (!%p1370_p5)
}
  0x2e   :  { %109 = dma.hbm_to_vmem [thread:$0]  %s1773_s7, 128, %s107_s16, [#allocation16]  }
  0x2f   :  { %s1554_s23 = smov [#allocation18]   ;;  %s1555_s25 = smov [#allocation3]  }
  0x30   :  { %s129_s24 = sshll.u32 %s1554_s23, 4  ;;  %s30_s26 = sshll.u32 %s1555_s25, 4  ;;  %s130_s24 = int_to_ptr.vmem [resolvable:$true] %s129_s24  ;;  %s31_s26 = int_to_ptr.vmem [resolvable:$true] %s30_s26 }
  0x31   :  { %s1382_s27 = scalar_lea.vmem %s130_s24, 2048  ;;  %p1387_p7 = scmp.lt.s32.totalorder %s130_s24, %s130_s24 }
  0x32   :  { %p1383_p6 = scmp.ne.s32.totalorder %s130_s24, %s1382_s27  ;;  %p1388_p8 = scmp.lt.s32.totalorder %s1382_s27, %s1382_s27 }
  0x34   :  { %p1389_p9 = por %p1388_p8, %p1387_p7 }
  0x36   :  { %p1390_p10 = pnand %p1389_p9, %p1383_p6 }
  0x38   :  { %1393 = shalt.err (!%p1390_p10)
}
  0x39   :  { %135 = dma.hbm_to_vmem [thread:$0]  %s1776_s10, 2048, %s130_s24, [#allocation19], %s1552_s1, %s1552_s1, %s1553_s18  }
  0x3a   :  { %s1402_s7 = scalar_lea.vmem %s31_s26, 128  ;;  %p1407_p12 = scmp.lt.s32.totalorder %s31_s26, %s31_s26 }
  0x3b   :  { %p1403_p11 = scmp.ne.s32.totalorder %s31_s26, %s1402_s7  ;;  %p1408_p13 = scmp.lt.s32.totalorder %s1402_s7, %s1402_s7 }
  0x3d   :  { %p1409_p0 = por %p1408_p13, %p1407_p12 }
  0x3f   :  { %p1410_p1 = pnand %p1409_p0, %p1403_p11 }
  0x41   :  { %1413 = shalt.err (!%p1410_p1)
}
  0x42   :  { %33 = dma.hbm_to_vmem [thread:$0]  %s1766_s0, 128, %s31_s26, [#allocation4]  }
  0x43   :  { %s1556_s13 = smov [#allocation8]   ;;  %s1557_s15 = smov [#allocation11]  }
  0x44   :  { %s50_s14 = sshll.u32 %s1556_s13, 4  ;;  %s69_s16 = sshll.u32 %s1557_s15, 4  ;;  %s51_s14 = int_to_ptr.vmem [resolvable:$true] %s50_s14  ;;  %s70_s16 = int_to_ptr.vmem [resolvable:$true] %s69_s16 }
  0x45   :  { %s1422_s17 = scalar_lea.vmem %s51_s14, 128  ;;  %p1427_p3 = scmp.lt.s32.totalorder %s51_s14, %s51_s14 }
  0x46   :  { %p1423_p2 = scmp.ne.s32.totalorder %s51_s14, %s1422_s17  ;;  %p1428_p4 = scmp.lt.s32.totalorder %s1422_s17, %s1422_s17 }
  0x48   :  { %p1429_p5 = por %p1428_p4, %p1427_p3 }
  0x4a   :  { %p1430_p6 = pnand %p1429_p5, %p1423_p2 }
  0x4c   :  { %1433 = shalt.err (!%p1430_p6)
}
  0x4d   :  { %53 = dma.hbm_to_vmem [thread:$0]  %s1768_s2, 128, %s51_s14, [#allocation7]  }
  0x4e   :  { %s1442_s3 = scalar_lea.vmem %s70_s16, 256  ;;  %p1447_p8 = scmp.lt.s32.totalorder %s70_s16, %s70_s16 }
  0x4f   :  { %p1443_p7 = scmp.ne.s32.totalorder %s70_s16, %s1442_s3  ;;  %p1448_p9 = scmp.lt.s32.totalorder %s1442_s3, %s1442_s3 }
  0x51   :  { %p1449_p10 = por %p1448_p9, %p1447_p8 }
  0x53   :  { %p1450_p11 = pnand %p1449_p10, %p1443_p7 }
  0x55   :  { %1453 = shalt.err (!%p1450_p11)
}
  0x56   :  { %75 = dma.hbm_to_vmem [thread:$0]  %s1770_s4, 256, %s70_s16, [#allocation10], %s1552_s1, %s1552_s1, %s1553_s18  }
  0x57   :  { %s1558_s21 = smov [#allocation14]   ;;  %s1559_s23 = smov [#allocation17]  }
  0x58   :  { %s93_s22 = sshll.u32 %s1558_s21, 4  ;;  %s115_s24 = sshll.u32 %s1559_s23, 4  ;;  %s94_s22 = int_to_ptr.vmem [resolvable:$true] %s93_s22  ;;  %s116_s24 = int_to_ptr.vmem [resolvable:$true] %s115_s24 }
  0x59   :  { %s1462_s2 = scalar_lea.vmem %s94_s22, 2048  ;;  %p1467_p13 = scmp.lt.s32.totalorder %s94_s22, %s94_s22 }
  0x5a   :  { %p1463_p12 = scmp.ne.s32.totalorder %s94_s22, %s1462_s2  ;;  %p1468_p0 = scmp.lt.s32.totalorder %s1462_s2, %s1462_s2 }
  0x5c   :  { %p1469_p1 = por %p1468_p0, %p1467_p13 }
  0x5e   :  { %p1470_p2 = pnand %p1469_p1, %p1463_p12 }
  0x60   :  { %1473 = shalt.err (!%p1470_p2)
}
  0x61   :  { %99 = dma.hbm_to_vmem [thread:$0]  %s1772_s6, 2048, %s94_s22, [#allocation13], %s1552_s1, %s1552_s1, %s1553_s18  }
  0x62   :  { %s1482_s4 = scalar_lea.vmem %s116_s24, 256  ;;  %p1487_p4 = scmp.lt.s32.totalorder %s116_s24, %s116_s24 }
  0x63   :  { %p1483_p3 = scmp.ne.s32.totalorder %s116_s24, %s1482_s4  ;;  %p1488_p5 = scmp.lt.s32.totalorder %s1482_s4, %s1482_s4 }
  0x65   :  { %p1489_p6 = por %p1488_p5, %p1487_p4 }
  0x67   :  { %p1490_p7 = pnand %p1489_p6, %p1483_p3 }
  0x69   :  { %1493 = shalt.err (!%p1490_p7)
}
  0x6a   :  { %121 = dma.hbm_to_vmem [thread:$0]  %s1774_s8, 256, %s116_s24, [#allocation16], %s1552_s1, %s1552_s1, %s1553_s18  }
  0x6b   :  { %s1560_s28 = smov [#allocation20]  }
  0x6c   :  { %s142_s7 = sshll.u32 %s1560_s28, 4  ;;  %s143_s7 = int_to_ptr.vmem [resolvable:$true] %s142_s7 }
  0x6d   :  { %s1502_s29 = scalar_lea.vmem %s143_s7, 128  ;;  %p1507_p9 = scmp.lt.s32.totalorder %s143_s7, %s143_s7 }
  0x6e   :  { %p1503_p8 = scmp.ne.s32.totalorder %s143_s7, %s1502_s29  ;;  %p1508_p10 = scmp.lt.s32.totalorder %s1502_s29, %s1502_s29 }
  0x70   :  { %p1509_p11 = por %p1508_p10, %p1507_p9 }
  0x72   :  { %p1510_p12 = pnand %p1509_p11, %p1503_p8 }
  0x74   :  { %1513 = shalt.err (!%p1510_p12)
}
  0x75   :  { %145 = dma.hbm_to_vmem [thread:$0]  %s1777_s11, 128, %s143_s7, [#allocation19]  }
  0x76   :  { %1534 = dma.done.wait [#allocation4], 128  }
  0x77   :  { %1535 = vsyncadd [#allocation4], 4294967168 }
  0x78   :  { %1536 = dma.done.wait [#allocation7], 256  }
  0x79   :  { %1537 = vsyncadd [#allocation7], 4294967040 }
  0x7a   :  { %1538 = dma.done.wait [#allocation10], 384  }
  0x7b   :  { %1539 = vsyncadd [#allocation10], 4294966912 }
  0x7c   :  { %1540 = dma.done.wait [#allocation13], 2304  }
  0x7d   :  { %1541 = vsyncadd [#allocation13], 4294964992 }
  0x7e   :  { %1542 = dma.done.wait [#allocation16], 384  }
  0x7f   :  { %1543 = vsyncadd [#allocation16], 4294966912 }
  0x80   :  { %1544 = dma.done.wait [#allocation19], 2176  }
  0x81   :  { %1545 = vsyncadd [#allocation19], 4294965120  ;;  %v1561_v0 = vmov 0.0   ;;  %vm1562_vm0 = vmmov 0   ;;  %v193_v1 = vld [vmem:[#allocation11 + $0x8] sm:$0xff]  ;;  %v192_v2 = vld [vmem:[#allocation11] sm:$0xff]  ;;  %v179_v45 = vlaneseq }
  0x82   :  { %1111 = vmatprep.subr.mxu1 %v1561_v0  ;;  %1115 = vmatprep.mubr.msk.f32.mxu1 %vm1562_vm0, %v1561_v0  ;;  %v188_v3 = vld [vmem:[#allocation3] sm:$0xff]  ;;  %vm215_vm1 = vcmask 130048   ;;  %v195_v4 = vld [vmem:[#allocation12 + $0x8] sm:$0xff]  ;;  %v540_v5 = vld [vmem:[#allocation17 + $0x8] sm:$0xff]  ;;  %vm881_vm2 = vcmask 7168  }
  0x83   :  { %1167 = vmatprep.subr.mxu0 %v1561_v0  ;;  %1171 = vmatprep.mubr.msk.f32.mxu0 %vm1562_vm0, %v1561_v0  ;;  %v194_v6 = vld [vmem:[#allocation12] sm:$0xff]  ;;  %v539_v7 = vld [vmem:[#allocation17] sm:$0xff]  ;;  %v541_v11 = vld [vmem:[%s1775_s9] sm:$0xff]  ;;  %v1714_v46 = vshrl.u32 %v179_v45, 7  ;;  %s1563_s8 = smov -18.420681  }
  0x84   :  { %1112 = vmatpush3.msra.mxu1 %v193_v1  ;;  %1168 = vmatpush3.msra.mxu0 %v540_v5  ;;  %v189_v8 = vld [vmem:[#allocation6] sm:$0xff]  ;;  %v190_v9 = vld [vmem:[#allocation8] sm:$0xff]  ;;  %v211_v12 = vld [vmem:[#allocation14 + $0x78] sm:$0xff] }
  0x85   :  { %1113 = vmatprep.subr.mxu1 %v1561_v0  ;;  %1169 = vmatprep.subr.mxu0 %v1561_v0  ;;  %v542_v10 = vld [vmem:[%s1775_s9 + $0x8] sm:$0xff]  ;;  %v210_v13 = vld [vmem:[#allocation14 + $0x70] sm:$0xff]  ;;  %v191_v14 = vld [vmem:[#allocation9] sm:$0xff]  ;;  %v439_v47 = vsub.s32 0, %v1714_v46  ;;  %vm185_vm3 = vcmp.eq.s32.totalorder %v1714_v46, 1  ;;  %vm973_vm4 = vcmp.eq.s32.totalorder %v1714_v46, 0 }
  0x86   :  { %1114 = vmatpush3.msra.mxu1 %v192_v2  ;;  %1170 = vmatpush3.msra.mxu0 %v539_v7  ;;  %v209_v15 = vld [vmem:[#allocation14 + $0x68] sm:$0xff]  ;;  %v208_v16 = vld [vmem:[#allocation14 + $0x60] sm:$0xff]  ;;  %v207_v17 = vld [vmem:[#allocation14 + $0x58] sm:$0xff] }
  0x87   :  { %1116 = vmatmul.mubr.msk.f32.vlgmr.msra.gmra.mxu1 %vm215_vm1, %v188_v3  ;;  %1118 = vmatprep.subr.mxu1 %v1561_v0  ;;  %v206_v18 = vld [vmem:[#allocation14 + $0x50] sm:$0xff]  ;;  %v205_v19 = vld [vmem:[#allocation14 + $0x48] sm:$0xff]  ;;  %v204_v20 = vld [vmem:[#allocation14 + $0x40] sm:$0xff] }
  0x88   :  { %1119 = vmatpush3.msra.mxu1 %v195_v4  ;;  %1122 = vmatprep.mubr.msk.f32.mxu1 %vm1562_vm0, %v1561_v0  ;;  %v203_v21 = vld [vmem:[#allocation14 + $0x38] sm:$0xff]  ;;  %v202_v22 = vld [vmem:[#allocation14 + $0x30] sm:$0xff]  ;;  %v201_v23 = vld [vmem:[#allocation14 + $0x28] sm:$0xff] }
  0x89   :  { %1120 = vmatprep.subr.mxu1 %v1561_v0  ;;  %1172 = vmatmul.mubr.msk.f32.vlgmr.msra.gmra.mxu0 %vm215_vm1, %v188_v3  ;;  %v200_v24 = vld [vmem:[#allocation14 + $0x20] sm:$0xff]  ;;  %v199_v25 = vld [vmem:[#allocation14 + $0x18] sm:$0xff]  ;;  %v198_v26 = vld [vmem:[#allocation14 + $0x10] sm:$0xff] }
  0x8a   :  { %1121 = vmatpush3.msra.mxu1 %v194_v6  ;;  %1174 = vmatprep.subr.mxu0 %v1561_v0  ;;  %v197_v27 = vld [vmem:[#allocation14 + $0x8] sm:$0xff]  ;;  %v196_v28 = vld [vmem:[#allocation14] sm:$0xff]  ;;  %v558_v29 = vld [vmem:[#allocation18 + $0x78] sm:$0xff] }
  0x8b   :  { %1123 = vmatmul.mubr.msk.f32.vlgmr.msra.gmra.mxu1 %vm215_vm1, %v189_v8  ;;  %1125 = vmatprep.subr.mxu1 %v1561_v0  ;;  %v557_v30 = vld [vmem:[#allocation18 + $0x70] sm:$0xff]  ;;  %v556_v31 = vld [vmem:[#allocation18 + $0x68] sm:$0xff]  ;;  %v555_v32 = vld [vmem:[#allocation18 + $0x60] sm:$0xff] }
  0x8c   :  { %1126 = vmatpush3.msra.mxu1 %v195_v4  ;;  %1129 = vmatprep.mubr.msk.f32.mxu1 %vm1562_vm0, %v1561_v0  ;;  %v554_v33 = vld [vmem:[#allocation18 + $0x58] sm:$0xff]  ;;  %v553_v34 = vld [vmem:[#allocation18 + $0x50] sm:$0xff]  ;;  %v552_v35 = vld [vmem:[#allocation18 + $0x48] sm:$0xff] }
  0x8d   :  { %1127 = vmatprep.subr.mxu1 %v1561_v0  ;;  %1175 = vmatpush3.msra.mxu0 %v542_v10  ;;  %v551_v36 = vld [vmem:[#allocation18 + $0x40] sm:$0xff]  ;;  %v550_v37 = vld [vmem:[#allocation18 + $0x38] sm:$0xff]  ;;  %v549_v38 = vld [vmem:[#allocation18 + $0x30] sm:$0xff] }
  0x8e   :  { %1128 = vmatpush3.msra.mxu1 %v194_v6  ;;  %1176 = vmatprep.subr.mxu0 %v1561_v0  ;;  %v548_v39 = vld [vmem:[#allocation18 + $0x28] sm:$0xff]  ;;  %v547_v40 = vld [vmem:[#allocation18 + $0x20] sm:$0xff]  ;;  %v546_v41 = vld [vmem:[#allocation18 + $0x18] sm:$0xff] }
  0x8f   :  { %1130 = vmatmul.mubr.msk.f32.vlgmr.msra.gmra.mxu1 %vm215_vm1, %v190_v9  ;;  %1178 = vmatprep.mubr.msk.f32.mxu0 %vm1562_vm0, %v1561_v0  ;;  %v545_v42 = vld [vmem:[#allocation18 + $0x10] sm:$0xff]  ;;  %v544_v43 = vld [vmem:[#allocation18 + $0x8] sm:$0xff]  ;;  %v543_v44 = vld [vmem:[#allocation18] sm:$0xff] }
  0x90   :  { %1177 = vmatpush3.msra.mxu0 %v541_v11  ;;  %1132 = vmatprep.subr.mxu1 %v211_v12  ;;  %v212_v49 = vld [vmem:[#allocation15] sm:$0xff]  ;;  %v559_v57 = vld [vmem:[#allocation20] sm:$0xff] }
  0x91   :  { %1179 = vmatmul.mubr.msk.f32.vlgmr.msra.gmra.mxu0 %vm215_vm1, %v189_v8  ;;  %1181 = vmatprep.subr.mxu0 %v1561_v0  ;;  %v440_v51 = vrot.slane %v212_v49, %v439_v47  ;;  %v780_v63 = vrot.slane %v559_v57, %v439_v47 }
  0x92   :  { %1182 = vmatpush3.msra.mxu0 %v542_v10  ;;  %1185 = vmatprep.mubr.msk.f32.mxu0 %vm1562_vm0, %v1561_v0 }
  0x93   :  { %1183 = vmatprep.subr.mxu0 %v1561_v0  ;;  %1133 = vmatpush3.msra.mxu1 %v211_v12 }
  0x94   :  { %1184 = vmatpush3.msra.mxu0 %v541_v11  ;;  %1134 = vmatprep.subr.mxu1 %v210_v13 }
  0x95   :  { %1186 = vmatmul.mubr.msk.f32.vlgmr.msra.gmra.mxu0 %vm215_vm1, %v191_v14  ;;  %1135 = vmatpush3.msra.mxu1 %v210_v13  ;;  %v213_v13 = vrot.slane %v212_v49, 3  ;;  %v447_v14 = vsub.s32 1, %v1714_v46 }
  0x96   :  { %1136 = vmatprep.subr.mxu1 %v209_v15  ;;  %1188 = vmatprep.subr.mxu0 %v558_v29 }
  0x97   :  { %1137 = vmatpush3.msra.mxu1 %v209_v15  ;;  %1189 = vmatpush3.msra.mxu0 %v558_v29  ;;  %1223 = vpush %v213_v13  ;;  %v448_v15 = vrot.slane %v212_v49, %v447_v14 }
  0x98   :  { %1138 = vmatprep.subr.mxu1 %v208_v16  ;;  %1190 = vmatprep.subr.mxu0 %v557_v30 }
  0x99   :  { %1139 = vmatpush3.msra.mxu1 %v208_v16  ;;  %1191 = vmatpush3.msra.mxu0 %v557_v30 }
  0x9a   :  { %1140 = vmatprep.subr.mxu1 %v207_v17  ;;  %1192 = vmatprep.subr.mxu0 %v556_v31 }
  0x9b   :  { %1141 = vmatpush3.msra.mxu1 %v207_v17  ;;  %1193 = vmatpush3.msra.mxu0 %v556_v31  ;;  %v528_v17 = vsub.s32 2, %v1714_v46 }
  0x9c   :  { %1142 = vmatprep.subr.mxu1 %v206_v18  ;;  %1194 = vmatprep.subr.mxu0 %v555_v32 }
  0x9d   :  { %1143 = vmatpush3.msra.mxu1 %v206_v18  ;;  %1195 = vmatpush3.msra.mxu0 %v555_v32  ;;  %v869_v32 = vrot.slane %v559_v57, %v528_v17 }
  0x9e   :  { %1144 = vmatprep.subr.mxu1 %v205_v19  ;;  %1196 = vmatprep.subr.mxu0 %v554_v33 }
  0x9f   :  { %1145 = vmatpush3.msra.mxu1 %v205_v19  ;;  %1197 = vmatpush3.msra.mxu0 %v554_v33 }
  0xa0   :  { %1146 = vmatprep.subr.mxu1 %v204_v20  ;;  %1198 = vmatprep.subr.mxu0 %v553_v34 }
  0xa1   :  { %1147 = vmatpush3.msra.mxu1 %v204_v20  ;;  %1199 = vmatpush3.msra.mxu0 %v553_v34 }
  0xa2   :  { %1148 = vmatprep.subr.mxu1 %v203_v21  ;;  %1200 = vmatprep.subr.mxu0 %v552_v35 }
  0xa3   :  { %1149 = vmatpush3.msra.mxu1 %v203_v21  ;;  %1201 = vmatpush3.msra.mxu0 %v552_v35 }
  0xa4   :  { %1150 = vmatprep.subr.mxu1 %v202_v22  ;;  %1202 = vmatprep.subr.mxu0 %v551_v36 }
  0xa5   :  { %1151 = vmatpush3.msra.mxu1 %v202_v22  ;;  %1203 = vmatpush3.msra.mxu0 %v551_v36  ;;  %v529_v22 = vrot.slane %v212_v49, %v528_v17 }
  0xa6   :  { %1152 = vmatprep.subr.mxu1 %v201_v23  ;;  %1204 = vmatprep.subr.mxu0 %v550_v37 }
  0xa7   :  { %1153 = vmatpush3.msra.mxu1 %v201_v23  ;;  %1205 = vmatpush3.msra.mxu0 %v550_v37 }
  0xa8   :  { %1154 = vmatprep.subr.mxu1 %v200_v24  ;;  %1206 = vmatprep.subr.mxu0 %v549_v38 }
  0xa9   :  { %1155 = vmatpush3.msra.mxu1 %v200_v24  ;;  %1207 = vmatpush3.msra.mxu0 %v549_v38 }
  0xaa   :  { %1156 = vmatprep.subr.mxu1 %v199_v25  ;;  %1208 = vmatprep.subr.mxu0 %v548_v39 }
  0xab   :  { %1157 = vmatpush3.msra.mxu1 %v199_v25  ;;  %1209 = vmatpush3.msra.mxu0 %v548_v39 }
  0xac   :  { %1158 = vmatprep.subr.mxu1 %v198_v26  ;;  %1210 = vmatprep.subr.mxu0 %v547_v40 }
  0xad   :  { %1159 = vmatpush3.msra.mxu1 %v198_v26  ;;  %1211 = vmatpush3.msra.mxu0 %v547_v40  ;;  %v788_v26 = vrot.slane %v559_v57, %v447_v14 }
  0xae   :  { %1160 = vmatprep.subr.mxu1 %v197_v27  ;;  %1212 = vmatprep.subr.mxu0 %v546_v41 }
  0xaf   :  { %1161 = vmatpush3.msra.mxu1 %v197_v27  ;;  %1213 = vmatpush3.msra.mxu0 %v546_v41 }
  0xb0   :  { %1162 = vmatprep.subr.mxu1 %v196_v28  ;;  %1214 = vmatprep.subr.mxu0 %v545_v42 }
  0xb1   :  { %1163 = vmatpush3.msra.mxu1 %v196_v28  ;;  %1215 = vmatpush3.msra.mxu0 %v545_v42  ;;  %v560_v28 = vrot.slane %v559_v57, 3 }
  0xb2   :  { %1216 = vmatprep.subr.mxu0 %v544_v43 }
  0xb3   :  { %1217 = vmatpush3.msra.mxu0 %v544_v43  ;;  %1225 = vpush %v560_v28  ;;  %v1724_v43 = vsel %vm185_vm3, -1e+30, %v1561_v0 }
  0xb4   :  { %1218 = vmatprep.subr.mxu0 %v543_v44  ;;  %1227 = vpush %v1724_v43 }
  0xb5   :  { %1219 = vmatpush3.msra.mxu0 %v543_v44 }
  0xc8   :  { %s1224_s9 = spop %1223 }
  0xc9   :  { %v536_v37 = vstv %s1224_s9 }
  0xe4   :  { %s1727_s13 = spop %1225 }
  0xe5   :  { %v876_v45 = vstv %s1727_s13  ;;  %s1733_s14 = spop %1227 }
 0x147   :  { %v285_v48 = vpop.f32.mrf.mxu1 }
 0x149   :  { %v1117_v50 = vpop.f32.mrf.mxu1  ;;  %v628_v55 = vpop.f32.mrf.mxu0 }
 0x14b   :  { %v358_v52 = vpop.f32.mrf.mxu1  ;;  %v1173_v59 = vpop.f32.mrf.mxu0 }
 0x14c   :  { %v362_v53 = vadd.f32 %v358_v52, %v285_v48 }
 0x14d   :  { %v1124_v54 = vpop.f32.mrf.mxu1 }
 0x14e   :  { %v441_v56 = vadd.f32 %v440_v51, %v362_v53 }
 0x14f   :  { %v432_v58 = vpop.f32.mrf.mxu1 }
 0x150   :  { %v443_v60 = vmax.f32 %v441_v56, 0.0  ;;  %v436_v61 = vadd.f32 %v432_v58, %v285_v48 }
 0x151   :  { %v1131_v62 = vpop.f32.mrf.mxu1  ;;  %v698_v2 = vpop.f32.mrf.mxu0 }
 0x152   :  { %v442_v1 = vadd.f32 %v440_v51, %v436_v61  ;;  %1164 = vmatprep.mubr.f32.mxu1 %v443_v60  ;;  %v702_v3 = vadd.f32 %v698_v2, %v628_v55 }
 0x153   :  { %v1180_v5 = vpop.f32.mrf.mxu0 }
 0x154   :  { %v444_v4 = vmax.f32 %v442_v1, 0.0  ;;  %v781_v6 = vadd.f32 %v780_v63, %v702_v3 }
 0x155   :  { %v772_v7 = vpop.f32.mrf.mxu0 }
 0x156   :  { %1165 = vmatmul.mubr.f32.vlgmr.msra.gmra.mxu1 %v444_v4  ;;  %v783_v8 = vmax.f32 %v781_v6, 0.0  ;;  %v776_v9 = vadd.f32 %v772_v7, %v628_v55  ;;  %v893_v6 = vrot.slane %v1724_v43, 1 }
 0x157   :  { %v1187_v10 = vpop.f32.mrf.mxu0 }
 0x158   :  { %v782_v11 = vadd.f32 %v780_v63, %v776_v9  ;;  %1220 = vmatprep.mubr.f32.mxu0 %v783_v8  ;;  %v903_v8 = vrot.slane %v1724_v43, 2 }
 0x15a   :  { %v784_v12 = vmax.f32 %v782_v11, 0.0 }
 0x15c   :  { %1221 = vmatmul.mubr.f32.vlgmr.msra.gmra.mxu0 %v784_v12 }
 0x216   :  { %v1166_v16 = vpop.f32.mrf.mxu1 }
 0x217   :  { %v521_v19 = vadd.f32 %v1166_v16, %v448_v15 }
 0x218   :  { %v515_v18 = vpop.f32.mrf.mxu1 }
 0x219   :  { %v516_v20 = vadd.f32 %v515_v18, %v448_v15  ;;  %v525_v23 = vmax.f32 %v521_v19, 0.0 }
 0x21b   :  { %v524_v21 = vmax.f32 %v516_v20, 0.0  ;;  %v531_v25 = vmul.f32 %v529_v22, %v525_v23 }
 0x21c   :  { %v1222_v27 = vpop.f32.mrf.mxu0 }
 0x21d   :  { %v530_v24 = vmul.f32 %v529_v22, %v524_v21  ;;  %v861_v29 = vadd.f32 %v1222_v27, %v788_v26 }
 0x21e   :  { %v855_v30 = vpop.f32.mrf.mxu0 }
 0x21f   :  { %532 = vadd.xlane.f32.xlu0 %v530_v24  ;;  %v856_v31 = vadd.f32 %v855_v30, %v788_v26  ;;  %v865_v33 = vmax.f32 %v861_v29, 0.0 }
 0x221   :  { %v864_v34 = vmax.f32 %v856_v31, 0.0  ;;  %v871_v35 = vmul.f32 %v869_v32, %v865_v33 }
 0x223   :  { %534 = vadd.xlane.f32.xlu0 %v531_v25  ;;  %v870_v36 = vmul.f32 %v869_v32, %v864_v34 }
 0x227   :  { %872 = vadd.xlane.f32.xlu0 %v870_v36 }
 0x2a8   :  { %v533_v38 = vpop.xlane.xlu0 %532 }
 0x2a9   :  { %v537_v39 = vadd.f32 %v536_v37, %v533_v38 }
 0x2ab   :  { %v882_v40 = vsel %vm881_vm2, %v537_v39, 0.0 }
 0x2ac   :  { %883 = vadd.xlane.f32.xlu1 %v882_v40  ;;  %v535_v41 = vpop.xlane.xlu0 %534 }
 0x2ad   :  { %v538_v42 = vadd.f32 %v536_v37, %v535_v41 }
 0x2af   :  { %v895_v58 = vrot.slane %v538_v42, 4 }
 0x2b0   :  { %874 = vadd.xlane.f32.xlu1 %v871_v35  ;;  %v873_v44 = vpop.xlane.xlu0 %872 }
 0x2b1   :  { %v877_v47 = vadd.f32 %v876_v45, %v873_v44  ;;  %v896_v59 = vmax.f32 %v538_v42, %v895_v58 }
 0x2b3   :  { %v929_v48 = vand.u32 2147483647, %v877_v47  ;;  %v928_v54 = vmax.f32 %v877_v47, 0.0  ;;  %v897_v62 = vrot.slane %v896_v59, 2 }
 0x2b5   :  { %v930_v49 = vsub.f32 0.0, %v929_v48  ;;  %v898_v2 = vmax.f32 %v896_v59, %v897_v62 }
 0x2b7   :  { %v931_v50 = vmul.f32 1.442695, %v930_v49  ;;  %v899_v5 = vrot.slane %v898_v2, 1 }
 0x2b9   :  { %1274 = vpow2.f32 %v931_v50  ;;  %v900_v9 = vmax.f32 %v898_v2, %v899_v5  ;;  %v926_v50 = vrot.slane %v1724_v43, 3 }
 0x2c6   :  { %v1275_v51 = vpop.eup %1274 }
 0x2c7   :  { %v933_v52 = vadd.f32 1.0, %v1275_v51 }
 0x2c9   :  { %1276 = vlog2.f32 %v933_v52 }
 0x2d6   :  { %v1277_v53 = vpop.eup %1276 }
 0x2d7   :  { %v935_v55 = vmul.f32 0.6931472, %v1277_v53  ;;  %v949_v53 = vrot.slane %v1724_v43, 4 }
 0x2d9   :  { %v936_v0 = vadd.f32 %v935_v55, %v928_v54 }
 0x2db   :  { %v937_v56 = vmin.f32 %v936_v0, 100.0 }
 0x2dd   :  { %v938_v57 = vsel %vm881_vm2, %v937_v56, 0.0 }
 0x2de   :  { %939 = vadd.xlane.f32.xlu0 %v938_v57 }
 0x335   :  { %v884_v60 = vpop.xlane.xlu1 %883 }
 0x336   :  { %v885_v61 = vrot.slane %v884_v60, 4 }
 0x338   :  { %v886_v63 = vadd.f32 %v885_v61, %v884_v60 }
 0x339   :  { %v875_v10 = vpop.xlane.xlu1 %874 }
 0x33a   :  { %v887_v1 = vrot.slane %v886_v63, 2  ;;  %v878_v11 = vadd.f32 %v876_v45, %v875_v10 }
 0x33c   :  { %v888_v3 = vadd.f32 %v887_v1, %v886_v63  ;;  %v951_v12 = vsub.f32 0.0, %v878_v11 }
 0x33e   :  { %v889_v4 = vrot.slane %v888_v3, 1  ;;  %v953_v13 = vand.u32 2147483647, %v951_v12  ;;  %v952_v24 = vmax.f32 %v951_v12, 0.0 }
 0x340   :  { %v890_v7 = vadd.f32 %v889_v4, %v888_v3  ;;  %v954_v14 = vsub.f32 0.0, %v953_v13 }
 0x342   :  { %1229 = vpush %v890_v7  ;;  %v955_v15 = vmul.f32 1.442695, %v954_v14 }
 0x343   :  { %1231 = vpush %v893_v6 }
 0x344   :  { %1233 = vpush %v900_v9  ;;  %1278 = vpow2.f32 %v955_v15 }
 0x345   :  { %1235 = vpush %v903_v8 }
 0x351   :  { %v1279_v16 = vpop.eup %1278 }
 0x352   :  { %v957_v17 = vadd.f32 1.0, %v1279_v16 }
 0x354   :  { %1280 = vlog2.f32 %v957_v17 }
 0x361   :  { %v1281_v23 = vpop.eup %1280 }
 0x362   :  { %v959_v25 = vmul.f32 0.6931472, %v1281_v23 }
 0x364   :  { %v960_v26 = vadd.f32 %v959_v25, %v952_v24 }
 0x366   :  { %v961_v30 = vmin.f32 %v960_v26, 100.0 }
 0x367   :  { %v940_v32 = vpop.xlane.xlu0 %939 }
 0x368   :  { %v962_v31 = vsel %vm881_vm2, %v961_v30, 0.0  ;;  %v941_v33 = vrot.slane %v940_v32, 4 }
 0x36a   :  { %v942_v34 = vadd.f32 %v941_v33, %v940_v32 }
 0x36c   :  { %v943_v36 = vrot.slane %v942_v34, 2 }
 0x36e   :  { %v944_v40 = vadd.f32 %v943_v36, %v942_v34 }
 0x370   :  { %v945_v49 = vrot.slane %v944_v40, 1 }
 0x372   :  { %v946_v54 = vadd.f32 %v945_v49, %v944_v40 }
 0x373   :  { %s1735_s15 = spop %1229 }
 0x374   :  { %s892_s16 = sadd.f32 %s1735_s15, %s1733_s14  ;;  %s1232_s17 = spop %1231 }
 0x375   :  { %s1234_s10 = spop %1233 }
 0x376   :  { %s1739_s19 = smax.f32 %s1234_s10, %s1232_s17  ;;  %s1236_s0 = spop %1235 }
 0x377   :  { %s905_s3 = ssub.f32 %s1232_s17, %s1739_s19  ;;  %v911_v18 = vstv %s1739_s19 }
 0x378   :  { %v912_v19 = vsub.f32 %v538_v42, %v911_v18 }
 0x379   :  { %v906_v20 = vstv %s905_s3 }
 0x37a   :  { %v907_v21 = vmul.f32 1.442695, %v906_v20  ;;  %v913_v22 = vmul.f32 1.442695, %v912_v19 }
 0x37c   :  { %1282 = vpow2.f32 %v907_v21 }
 0x37d   :  { %1284 = vpow2.f32 %v913_v22 }
 0x389   :  { %v1283_v27 = vpop.eup %1282 }
 0x38a   :  { %v1285_v28 = vpop.eup %1284  ;;  %1237 = vpush %v1283_v27 }
 0x38b   :  { %v915_v29 = vsel %vm881_vm2, %v1285_v28, 0.0 }
 0x38c   :  { %916 = vadd.xlane.f32.xlu1 %v915_v29 }
 0x390   :  { %963 = vadd.xlane.f32.xlu1 %v962_v31 }
 0x3bb   :  { %s1238_s20 = spop %1237 }
 0x3bc   :  { %s910_s21 = smul.f32 %s1238_s20, %s1236_s0  ;;  %s1564_s0 = smov [#allocation21]  }
 0x3bd   :  { %s1036_s20 = sshll.u32 %s1564_s0, 4  ;;  %s1037_s20 = int_to_ptr.vmem [resolvable:$true] %s1036_s20 }
 0x3be   :  { %p1519_p0 = scmp.lt.s32.totalorder %s1037_s20, %s1037_s20 }
 0x415   :  { %v917_v35 = vpop.xlane.xlu1 %916 }
 0x416   :  { %v918_v37 = vrot.slane %v917_v35, 4 }
 0x418   :  { %v919_v38 = vadd.f32 %v918_v37, %v917_v35 }
 0x419   :  { %v964_v39 = vpop.xlane.xlu1 %963 }
 0x41a   :  { %v920_v41 = vrot.slane %v919_v38, 2  ;;  %v965_v42 = vrot.slane %v964_v39, 4 }
 0x41c   :  { %v966_v44 = vadd.f32 %v965_v42, %v964_v39  ;;  %v921_v45 = vadd.f32 %v920_v41, %v919_v38 }
 0x41e   :  { %v967_v47 = vrot.slane %v966_v44, 2  ;;  %v922_v48 = vrot.slane %v921_v45, 1 }
 0x420   :  { %v968_v51 = vadd.f32 %v967_v47, %v966_v44  ;;  %v923_v52 = vadd.f32 %v922_v48, %v921_v45 }
 0x422   :  { %1239 = vpush %v923_v52  ;;  %v969_v55 = vrot.slane %v968_v51, 1 }
 0x423   :  { %1241 = vpush %v926_v50 }
 0x424   :  { %1243 = vpush %v946_v54  ;;  %v970_v0 = vadd.f32 %v969_v55, %v968_v51 }
 0x425   :  { %1245 = vpush %v949_v53 }
 0x426   :  { %1247 = vpush %v970_v0 }
 0x453   :  { %s1240_s22 = spop %1239 }
 0x454   :  { %s925_s23 = sadd.f32 %s1240_s22, %s910_s21  ;;  %s1242_s24 = spop %1241 }
 0x455   :  { %s1244_s2 = spop %1243  ;;  %s1514_s22 = scalar_lea.vmem %s1037_s20, 128 }
 0x456   :  { %v982_v56 = vstv %s925_s23  ;;  %s948_s25 = sadd.f32 %s1244_s2, %s1242_s24  ;;  %s1246_s26 = spop %1245 }
 0x457   :  { %1286 = vlog2.f32 %v982_v56  ;;  %s1248_s4 = spop %1247  ;;  %p1515_p13 = scmp.ne.s32.totalorder %s1037_s20, %s1514_s22 }
 0x458   :  { %s972_s27 = sadd.f32 %s1248_s4, %s1246_s26  ;;  %s1747_s5 = smul.f32 0.125, %s948_s25 }
 0x459   :  { %p1520_p1 = scmp.lt.s32.totalorder %s1514_s22, %s1514_s22 }
 0x45a   :  { %s1749_s28 = smul.f32 0.125, %s972_s27 }
 0x45b   :  { %p1521_p2 = por %p1520_p1, %p1519_p0 }
 0x45c   :  { %s1024_s7 = sadd.f32 %s1749_s28, %s1747_s5 }
 0x45d   :  { %p1522_p3 = pnand %p1521_p2, %p1515_p13 }
 0x45e   :  { %v1025_v4 = vstv %s1024_s7 }
 0x45f   :  { %v1026_v5 = vsel %vm185_vm3, %v1025_v4, 0.0 }
 0x464   :  { %v1287_v43 = vpop.eup %1286 }
 0x465   :  { %v996_v57 = vmul.f32 0.6931472, %v1287_v43 }
 0x467   :  { %1249 = vpush %v996_v57 }
 0x498   :  { %s1250_s29 = spop %1249 }
 0x499   :  { %s998_s6 = sadd.f32 %s1250_s29, %s1739_s19  ;;  %s993_s19 = smul.f32 0.125, %s892_s16 }
 0x49b   :  { %s1056_s30 = sadd.f32 -2.0794415, %s998_s6 }
 0x49d   :  { %s1000_s11 = smax.f32 %s1563_s8, %s1056_s30 }
 0x49e   :  { %s1001_s1 = ssub.f32 %s1056_s30, %s1000_s11 }
 0x49f   :  { %s1006_s18 = ssub.f32 -18.420681, %s1000_s11 }
 0x4a0   :  { %v1002_v58 = vstv %s1001_s1 }
 0x4a1   :  { %v1003_v59 = vmul.f32 1.442695, %v1002_v58  ;;  %v1007_v60 = vstv %s1006_s18 }
 0x4a2   :  { %v1008_v61 = vmul.f32 1.442695, %v1007_v60 }
 0x4a3   :  { %1288 = vpow2.f32 %v1003_v59 }
 0x4a4   :  { %1290 = vpow2.f32 %v1008_v61 }
 0x4b0   :  { %v1289_v62 = vpop.eup %1288 }
 0x4b1   :  { %v1291_v63 = vpop.eup %1290  ;;  %1251 = vpush %v1289_v62 }
 0x4b2   :  { %1253 = vpush %v1291_v63 }
 0x4e2   :  { %s1252_s9 = spop %1251 }
 0x4e3   :  { %s1254_s13 = spop %1253 }
 0x4e4   :  { %s1011_s17 = sadd.f32 %s1254_s13, %s1252_s9 }
 0x4e6   :  { %v1012_v1 = vstv %s1011_s17 }
 0x4e7   :  { %1292 = vlog2.f32 %v1012_v1 }
 0x4f4   :  { %v1293_v2 = vpop.eup %1292 }
 0x4f5   :  { %v1014_v3 = vmul.f32 0.6931472, %v1293_v2 }
 0x4f7   :  { %1255 = vpush %v1014_v3 }
 0x528   :  { %s1256_s10 = spop %1255 }
 0x529   :  { %s1016_s3 = sadd.f32 %s1256_s10, %s1000_s11 }
 0x52b   :  { %s1017_s21 = ssub.f32 %s993_s19, %s1016_s3 }
 0x52d   :  { %v1027_v6 = vstv %s1017_s21 }
 0x52e   :  { %v1028_v7 = vsel %vm973_vm4, %v1027_v6, %v1026_v5 }
 0x52f   :  { %1029 = vst [vmem:[#allocation21] sm:$0xff] %v1028_v7 }
 0x530   :  { %1525 = shalt.err (!%p1522_p3)
}
 0x531   :  { %1039 = dma.vmem_to_hbm [thread:$0]  %s1037_s20, 128, %s1778_s12, [#allocation5]  }
 0x532   :  { %1546 = dma.done.wait [#allocation5], 128  }
 0x533   :  { %1547 = vsyncadd [#allocation5], 4294967168 }
 0x534   :  { %1043 = vsyncpa [#allocation4], 1 }
 0x535   :  { %1044 = vsyncpa [#allocation7], 1 }
 0x536   :  { %1045 = vsyncpa [#allocation10], 1 }
 0x537   :  { %1046 = vsyncpa [#allocation13], 1 }
 0x538   :  { %1047 = vsyncpa [#allocation16], 1 }
 0x539   :  { %1048 = vsyncpa [#allocation19], 1 }
 0x53a   :  { %1049 = vsyncpa [#allocation5], 1 }

</bundles_post_ra>
